<compile_context>
chip_gen: v5e
topology: v5e:2x2
jax: 0.10.0
libtpu: 0.0.40
codegen_flags: <defaults>
</compile_context>

<pallas_src>
import functools

import jax
import jax.numpy as jnp
from jax.experimental import pallas as pl
from jax.experimental.pallas import tpu as pltpu

_LANE = 128
_SUBLANE = 8
_INT32_MAX = 2147483647


def _round_up(x, m):
    return ((x + m - 1) // m) * m


def _vmem_capacity_bytes():
    try:
        cap = int(getattr(pltpu.get_tpu_info(), "vmem_capacity_bytes"))
        if cap > 0:
            return cap
    except Exception:
        pass
    return 64 * 1024 * 1024  # conservative fallback (v7x: 64 MiB per TensorCore)


def _select_tiles(batch, d, c, *, block_b=None, block_c=None, w_elem_bytes=2):
    """Pick batch/class tile sizes that fit the per-generation VMEM budget."""
    cap = _vmem_capacity_bytes()
    budget = int(cap * 0.55)
    d_pad = _round_up(d, _LANE)
    c_pad0 = _round_up(c, _LANE)

    shrink_c = block_c is None
    if block_b is None:
        block_b = max(_SUBLANE, min(_round_up(batch, _SUBLANE), 512))
    else:
        block_b = max(_SUBLANE, _round_up(int(block_b), _SUBLANE))
    if block_c is None:
        block_c = c_pad0
    else:
        block_c = min(max(_LANE, _round_up(int(block_c), _LANE)), c_pad0)

    def _usage(bb, bc):
        w_bufs = 1 if bc >= c_pad0 else 2            # resident weight -> single buffer
        w_bytes = w_bufs * d_pad * bc * w_elem_bytes
        x_bytes = 2 * bb * d_pad * 4                 # f32 x tiles, double buffered
        tmp_bytes = bb * d_pad * w_elem_bytes + 6 * bb * bc * 4
        out_bytes = 3 * 2 * _SUBLANE * _LANE * 4
        return w_bytes + x_bytes + tmp_bytes + out_bytes + (1 << 20)

    # Shrink the class tile first (keeps the MXU-fed batch tile), then the batch tile.
    while shrink_c and _usage(block_b, block_c) > budget and block_c > _LANE:
        block_c = _round_up(block_c // 2, _LANE)
    while _usage(block_b, block_c) > budget and block_b > _SUBLANE:
        block_b = max(_SUBLANE, _round_up(block_b // 2, _SUBLANE))

    vmem_limit = int(min(cap, max(int(cap * 0.7), 16 << 20)))
    return block_b, block_c, vmem_limit


def _exact_solution_kernel(x_ref, w_ref, pmin_ref, parg_ref, pmax_ref,
                           mind_s, arg_s, maxo_s,
                           *, batch, n_classes, block_b, block_c):
    i = pl.program_id(0)              # batch block  ("parallel" -> megacore sharded)
    j = pl.program_id(1)              # class block  ("arbitrary" -> reduced in SMEM)

    @pl.when(j == 0)
    def _init():
        mind_s[0] = jnp.float32(jnp.inf)
        arg_s[0] = jnp.int32(0)
        maxo_s[0] = jnp.float32(-jnp.inf)

    x = x_ref[...]                                            # (block_b, d_pad) f32
    # l2_norm folded into a post-matmul scale; padded columns of x are zero.
    inv_norm = jax.lax.rsqrt(jnp.sum(x * x, axis=1, keepdims=True) + 1e-12)

    # bf16 operands on the MXU, f32 accumulation.
    out = jnp.dot(x.astype(w_ref.dtype), w_ref[...],
                  preferred_element_type=jnp.float32) * inv_norm
    out = jnp.where(out > 1.0, 2.0 - out, out)                # (block_b, block_c)

    # Cheap additive +inf penalties for padded rows / columns (padded entries would
    # otherwise evaluate to out == 0 and corrupt argmin / max).
    row = jax.lax.broadcasted_iota(jnp.int32, (block_b, 1), 0) + i * block_b
    col = jax.lax.broadcasted_iota(jnp.int32, (1, block_c), 1) + j * block_c
    pen = (jnp.where(row < batch, 0.0, jnp.inf)
           + jnp.where(col < n_classes, 0.0, jnp.inf))        # (block_b, block_c)

    diff = jnp.abs(1.0 - out) + pen
    blk_min = jnp.min(diff)
    blk_max = jnp.max(out - pen)

    maxo_s[0] = jnp.maximum(maxo_s[0], blk_max)

    # Only run the full-tile argmin-candidate pass when this block improves the running
    # minimum; strict `<` keeps the lowest flat index on ties (torch flat-argmin order).
    @pl.when(blk_min < mind_s[0])
    def _improve():
        flat = row * n_classes + col                          # row-major flat index
        cand = jnp.where(diff == blk_min, flat, jnp.int32(_INT32_MAX))
        arg_s[0] = jnp.min(cand)
        mind_s[0] = blk_min

    # Emit per-batch-block partials once the class sweep finishes; the final (tiny)
    # reduce over batch blocks happens in plain JAX outside the kernel.
    @pl.when(j == pl.num_programs(1) - 1)
    def _finalize():
        pmin_ref[...] = jnp.full((1, _SUBLANE, _LANE), mind_s[0], dtype=jnp.float32)
        parg_ref[...] = jnp.full((1, _SUBLANE, _LANE), arg_s[0], dtype=jnp.int32)
        pmax_ref[...] = jnp.full((1, _SUBLANE, _LANE), maxo_s[0], dtype=jnp.float32)


@functools.partial(jax.jit,
                   static_argnames=("n_classes", "block_b", "block_c", "vmem_limit"))
def _exact_solution_call(embedding, w_padded, *, n_classes, block_b, block_c,
                         vmem_limit):
    B, D = embedding.shape
    d_pad, c_pad = w_padded.shape
    assert d_pad % _LANE == 0 and c_pad % block_c == 0

    b_pad = _round_up(B, block_b)
    nb = b_pad // block_b
    nc = c_pad // block_c

    x = jnp.zeros((b_pad, d_pad), jnp.float32).at[:B, :D].set(
        embedding.astype(jnp.float32))

    kernel = functools.partial(_exact_solution_kernel, batch=B, n_classes=n_classes,
                               block_b=block_b, block_c=block_c)

    if nc == 1:
        # Constant index map -> the second pipeline buffer is pure VMEM waste.
        w_spec = pl.BlockSpec((d_pad, block_c), lambda i, j: (0, 0),
                              pipeline_mode=pl.Buffered(1))
    else:
        w_spec = pl.BlockSpec((d_pad, block_c), lambda i, j: (0, j))

    w_itemsize = int(jnp.dtype(w_padded.dtype).itemsize)
    cost = pl.CostEstimate(
        flops=2 * b_pad * d_pad * c_pad + 6 * b_pad * c_pad,
        transcendentals=b_pad * nc,
        bytes_accessed=4 * b_pad * d_pad
        + w_itemsize * d_pad * c_pad * (nb if nc > 1 else 1),
    )

    out_sds = jax.ShapeDtypeStruct((nb, _SUBLANE, _LANE), jnp.float32)
    out_spec = pl.BlockSpec((1, _SUBLANE, _LANE), lambda i, j: (i, 0, 0))

    pmin, parg, pmax = pl.pallas_call(
        kernel,
        grid=(nb, nc),
        out_shape=(out_sds,
                   jax.ShapeDtypeStruct((nb, _SUBLANE, _LANE), jnp.int32),
                   out_sds),
        in_specs=[
            pl.BlockSpec((block_b, d_pad), lambda i, j: (i, 0)),   # batch tile (f32)
            w_spec,                                                # weight tile (bf16)
        ],
        out_specs=(out_spec, out_spec, out_spec),
        scratch_shapes=[
            pltpu.SMEM((1,), jnp.float32),   # running min |1 - out|
            pltpu.SMEM((1,), jnp.int32),     # running flat argmin
            pltpu.SMEM((1,), jnp.float32),   # running max(out)
        ],
        compiler_params=pltpu.CompilerParams(
            dimension_semantics=("parallel", "arbitrary"),
            vmem_limit_bytes=vmem_limit,
        ),
        cost_estimate=cost,
    )(x, w_padded)

    # Final reduce over batch-block partials (first occurrence on ties -> lowest
    # flat index, matching torch's flat argmin tie-break).
    pmin_rows = pmin[:, 0, 0]
    best = jnp.argmin(pmin_rows)
    flat_idx = parg[best, 0, 0]
    conf = jnp.max(pmax[:, 0, 0])
    return flat_idx.astype(jnp.int32), conf


def exact_solution_forward(embedding, weight_dc, *, block_b=None, block_c=None,
                           compute_dtype=jnp.bfloat16):
    """embedding: (D,) or (B, D); weight_dc: (D, C) == torch linear.weight.T."""
    embedding = jnp.asarray(embedding)
    if embedding.ndim < 2:
        embedding = embedding[None, :]
    weight_dc = jnp.asarray(weight_dc)
    B, D = embedding.shape
    Dw, C = weight_dc.shape
    assert D == Dw, (D, Dw)
    assert B * C < 2 ** 31, "flat argmin index is int32"

    compute_dtype = jnp.dtype(compute_dtype)
    block_b, block_c, vmem_limit = _select_tiles(
        B, D, C, block_b=block_b, block_c=block_c,
        w_elem_bytes=compute_dtype.itemsize)

    d_pad = _round_up(D, _LANE)
    c_pad = _round_up(C, block_c)
    w_padded = jnp.zeros((d_pad, c_pad), compute_dtype).at[:D, :C].set(
        weight_dc.astype(compute_dtype))

    return _exact_solution_call(embedding, w_padded, n_classes=C, block_b=block_b,
                                block_c=block_c, vmem_limit=vmem_limit)


class ExactSolutionPallas:
    """Mirrors ExactSolution.forward's output dict (label string + confidence).

    solve_exact() (pinverse fit) and binarize() are training-time host-side steps;
    only the forward pass is a Pallas kernel.
    """
    # TODO(synk): solve_exact's pinverse fit has no Pallas equivalent here; it is
    # expected to be done with standard JAX/NumPy and its result passed as weight_dc.

    def __init__(self, weight_dc, label_map, *, compute_dtype=jnp.bfloat16):
        weight_dc = jnp.asarray(weight_dc)
        self.D, self.C = weight_dc.shape
        self.label_map = label_map
        self.compute_dtype = jnp.dtype(compute_dtype)
        # Class tiling depends only on (D, C); pad + cast the weight ONCE here so
        # per-query forward() neither re-pads the largest array nor retraces.
        _, self._block_c, self._vmem_limit = _select_tiles(
            1, self.D, self.C, w_elem_bytes=self.compute_dtype.itemsize)
        d_pad = _round_up(self.D, _LANE)
        c_pad = _round_up(self.C, self._block_c)
        self.w_padded = jnp.zeros((d_pad, c_pad), self.compute_dtype).at[
            :self.D, :self.C].set(weight_dc.astype(self.compute_dtype))

    def forward(self, embedding):
        embedding = jnp.asarray(embedding)
        if embedding.ndim < 2:
            embedding = embedding[None, :]
        B = embedding.shape[0]
        assert B * self.C < 2 ** 31, "flat argmin index is int32"
        block_b, _, _ = _select_tiles(B, self.D, self.C, block_c=self._block_c,
                                      w_elem_bytes=self.compute_dtype.itemsize)
        idx, conf = _exact_solution_call(
            embedding, self.w_padded, n_classes=self.C, block_b=block_b,
            block_c=self._block_c, vmem_limit=self._vmem_limit)
        idx, conf = jax.device_get((idx, conf))
        return {"label": str(self.label_map[int(idx)]), "confidence": float(conf)}


if __name__ == "__main__":
    key = jax.random.PRNGKey(0)
    k_w, k_x1, k_x2, k_w2, k_x3 = jax.random.split(key, 5)

    # Small deterministic setup: embedding dim D=32, C=8 classes.
    D, C = 32, 8
    weight_dc = jax.random.normal(k_w, (D, C), dtype=jnp.float32) * 0.1
    label_map = [f"class_{i}" for i in range(C)]

    def reference(emb, w, compute_dtype=jnp.bfloat16):
        """Replicates the kernel's math (norm folded post-matmul, bf16 MXU operands)."""
        if emb.ndim < 2:
            emb = emb[None, :]
        emb = emb.astype(jnp.float32)
        inv_norm = jax.lax.rsqrt(jnp.sum(emb * emb, axis=1, keepdims=True) + 1e-12)
        out = jnp.dot(emb.astype(compute_dtype), jnp.asarray(w).astype(compute_dtype),
                      preferred_element_type=jnp.float32) * inv_norm
        out = jnp.where(out > 1.0, 2.0 - out, out)
        return jnp.abs(1.0 - out), float(jnp.max(out))

    def check(emb, w, idx, conf, conf_tol=1e-3):
        diff, ref_conf = reference(emb, w)
        flat = diff.reshape(-1)
        # Robust to sub-1e-5 numeric wobble: the chosen index must be a minimizer.
        assert 0 <= idx < flat.shape[0], idx
        assert float(flat[idx]) <= float(jnp.min(flat)) + 1e-5, \
            (idx, float(flat[idx]), float(jnp.min(flat)))
        assert abs(conf - ref_conf) <= conf_tol, (conf, ref_conf)

    # 1) Single embedding (1-D input, unsqueezed to (1, D)) through the module API.
    model = ExactSolutionPallas(weight_dc, label_map)
    x1 = jax.random.normal(k_x1, (D,), dtype=jnp.float32)
    res = model.forward(x1)
    chosen = label_map.index(res["label"])      # B == 1 -> flat index == class index
    check(x1, weight_dc, chosen, res["confidence"])

    # 2) Batched embeddings, small batch tile -> multi-block "parallel" batch grid,
    #    padded-row masking and the per-block partial reduction.
    x2 = jax.random.normal(k_x2, (20, D), dtype=jnp.float32)
    idx2, conf2 = exact_solution_forward(x2, weight_dc, block_b=8)
    jax.block_until_ready((idx2, conf2))
    check(x2, weight_dc, int(idx2), float(conf2))

    # 3) Wider head with a forced class tile -> exercises the class grid axis,
    #    padded-column masking and the flat-index column offsets.
    D3, C3 = 48, 200
    w3 = jax.random.normal(k_w2, (D3, C3), dtype=jnp.float32) * 0.05
    x3 = jax.random.normal(k_x3, (6, D3), dtype=jnp.float32)
    idx3, conf3 = exact_solution_forward(x3, w3, block_b=8, block_c=128)
    jax.block_until_ready((idx3, conf3))
    check(x3, w3, int(idx3), float(conf3))

    print("KERNEL_OK")
</pallas_src>

<mosaic_0001>
module attributes {stable_mosaic.version = 11 : i64} {
  func.func @_exact_solution_kernel(%arg0: i32, %arg1: i32, %arg2: memref<8x128xf32, #tpu.memory_space<vmem>>, %arg3: memref<128x128xbf16, #tpu.memory_space<vmem>>, %arg4: memref<1x8x128xf32, #tpu.memory_space<vmem>>, %arg5: memref<1x8x128xi32, #tpu.memory_space<vmem>>, %arg6: memref<1x8x128xf32, #tpu.memory_space<vmem>>, %arg7: memref<1xf32, #tpu.memory_space<smem>>, %arg8: memref<1xi32, #tpu.memory_space<smem>>, %arg9: memref<1xf32, #tpu.memory_space<smem>>) attributes {dimension_semantics = [#tpu.dimension_semantics<parallel>, #tpu.dimension_semantics<arbitrary>], iteration_bounds = array<i64: 1, 1>, scalar_prefetch = 0 : i64, scratch_operands = 3 : i64, tpu.core_type = #tpu.core_type<tc>, window_params = [{transform_indices = @transform_0, window_bounds = array<i64: 8, 128>}, {pipeline_mode = #tpu.pipeline_mode<synchronous>, transform_indices = @transform_1, window_bounds = array<i64: 128, 128>}, {transform_indices = @transform_2, window_bounds = array<i64: 1, 8, 128>}, {transform_indices = @transform_3, window_bounds = array<i64: 1, 8, 128>}, {transform_indices = @transform_4, window_bounds = array<i64: 1, 8, 128>}]} {
    %c0_i32 = arith.constant 0 : i32
    %0 = arith.cmpi eq, %arg1, %c0_i32 : i32
    %1 = arith.extui %0 : i1 to i32
    %c0_i32_0 = arith.constant 0 : i32
    %2 = arith.cmpi ne, %1, %c0_i32_0 : i32
    scf.if %2 {
      %cst_22 = arith.constant 0x7F800000 : f32
      %c0_23 = arith.constant 0 : index
      %64 = memref.load %arg7[%c0_23] : memref<1xf32, #tpu.memory_space<smem>>
      memref.store %cst_22, %arg7[%c0_23] : memref<1xf32, #tpu.memory_space<smem>>
      %c0_i32_24 = arith.constant 0 : i32
      %c0_25 = arith.constant 0 : index
      %65 = memref.load %arg8[%c0_25] : memref<1xi32, #tpu.memory_space<smem>>
      memref.store %c0_i32_24, %arg8[%c0_25] : memref<1xi32, #tpu.memory_space<smem>>
      %cst_26 = arith.constant 0xFF800000 : f32
      %c0_27 = arith.constant 0 : index
      %66 = memref.load %arg9[%c0_27] : memref<1xf32, #tpu.memory_space<smem>>
      memref.store %cst_26, %arg9[%c0_27] : memref<1xf32, #tpu.memory_space<smem>>
    } else {
    }
    %c0 = arith.constant 0 : index
    %c0_1 = arith.constant 0 : index
    %3 = vector.load %arg2[%c0, %c0_1] : memref<8x128xf32, #tpu.memory_space<vmem>>, vector<8x128xf32>
    %4 = arith.mulf %3, %3 : vector<8x128xf32>
    %cst = arith.constant dense<0.000000e+00> : vector<8xf32>
    %5 = vector.multi_reduction <add>, %4, %cst [1] : vector<8x128xf32> to vector<8xf32>
    %6 = vector.shape_cast %5 : vector<8xf32> to vector<8x1xf32>
    %cst_2 = arith.constant 9.99999996E-13 : f32
    %7 = vector.broadcast %cst_2 : f32 to vector<8x1xf32>
    %8 = arith.addf %6, %7 : vector<8x1xf32>
    %9 = math.rsqrt %8 : vector<8x1xf32>
    %10 = arith.truncf %3 : vector<8x128xf32> to vector<8x128xbf16>
    %c0_3 = arith.constant 0 : index
    %c0_4 = arith.constant 0 : index
    %11 = vector.load %arg3[%c0_3, %c0_4] : memref<128x128xbf16, #tpu.memory_space<vmem>>, vector<128x128xbf16>
    %cst_5 = arith.constant dense<0.000000e+00> : vector<8x128xf32>
    %12 = tpu.matmul %10, %11, %cst_5 {dimension_numbers = #tpu.dot_dimension_numbers<[1], [0], [0], [1], [0, 0, 1, 1], [], []>} : vector<8x128xbf16>, vector<128x128xbf16>, vector<8x128xf32> -> vector<8x128xf32>
    %13 = vector.broadcast %9 : vector<8x1xf32> to vector<8x128xf32>
    %14 = arith.mulf %12, %13 : vector<8x128xf32>
    %cst_6 = arith.constant 1.000000e+00 : f32
    %15 = vector.broadcast %cst_6 : f32 to vector<8x128xf32>
    %16 = arith.cmpf ogt, %14, %15 : vector<8x128xf32>
    %cst_7 = arith.constant 2.000000e+00 : f32
    %17 = vector.broadcast %cst_7 : f32 to vector<8x128xf32>
    %18 = arith.subf %17, %14 : vector<8x128xf32>
    %19 = arith.select %16, %18, %14 : vector<8x128xi1>, vector<8x128xf32>
    %20 = tpu.iota {dimensions = array<i32: 0>} : vector<8x1xi32>
    %c8_i32 = arith.constant 8 : i32
    %21 = arith.muli %arg0, %c8_i32 : i32
    %22 = vector.broadcast %21 : i32 to vector<8x1xi32>
    %23 = arith.addi %20, %22 : vector<8x1xi32>
    %24 = tpu.iota {dimensions = array<i32: 1>} : vector<1x128xi32>
    %c128_i32 = arith.constant 128 : i32
    %25 = arith.muli %arg1, %c128_i32 : i32
    %26 = vector.broadcast %25 : i32 to vector<1x128xi32>
    %27 = arith.addi %24, %26 : vector<1x128xi32>
    %c1_i32 = arith.constant 1 : i32
    %28 = vector.broadcast %c1_i32 : i32 to vector<8x1xi32>
    %29 = arith.cmpi slt, %23, %28 : vector<8x1xi32>
    %cst_8 = arith.constant 0.000000e+00 : f32
    %cst_9 = arith.constant 0x7F800000 : f32
    %30 = vector.broadcast %cst_8 : f32 to vector<8x1xf32>
    %31 = vector.broadcast %cst_9 : f32 to vector<8x1xf32>
    %32 = arith.select %29, %30, %31 : vector<8x1xi1>, vector<8x1xf32>
    %c8_i32_10 = arith.constant 8 : i32
    %33 = vector.broadcast %c8_i32_10 : i32 to vector<1x128xi32>
    %34 = arith.cmpi slt, %27, %33 : vector<1x128xi32>
    %cst_11 = arith.constant 0.000000e+00 : f32
    %cst_12 = arith.constant 0x7F800000 : f32
    %35 = vector.broadcast %cst_11 : f32 to vector<1x128xf32>
    %36 = vector.broadcast %cst_12 : f32 to vector<1x128xf32>
    %37 = arith.select %34, %35, %36 : vector<1x128xi1>, vector<1x128xf32>
    %38 = vector.broadcast %32 : vector<8x1xf32> to vector<8x128xf32>
    %39 = vector.broadcast %37 : vector<1x128xf32> to vector<8x128xf32>
    %40 = arith.addf %38, %39 : vector<8x128xf32>
    %cst_13 = arith.constant 1.000000e+00 : f32
    %41 = vector.broadcast %cst_13 : f32 to vector<8x128xf32>
    %42 = arith.subf %41, %19 : vector<8x128xf32>
    %43 = math.absf %42 : vector<8x128xf32>
    %44 = arith.addf %43, %40 : vector<8x128xf32>
    %45 = vector.shape_cast %44 : vector<8x128xf32> to vector<1x8x128xf32>
    %cst_14 = arith.constant dense<0x7F800000> : vector<1xf32>
    %46 = vector.multi_reduction <minimumf>, %45, %cst_14 [1, 2] : vector<1x8x128xf32> to vector<1xf32>
    %47 = vector.shape_cast %46 : vector<1xf32> to vector<1x1x1xf32>
    %48 = vector.extract %47[0, 0, 0] : f32 from vector<1x1x1xf32>
    %49 = arith.subf %19, %40 : vector<8x128xf32>
    %50 = vector.shape_cast %49 : vector<8x128xf32> to vector<1x8x128xf32>
    %cst_15 = arith.constant dense<0xFF800000> : vector<1xf32>
    %51 = vector.multi_reduction <maximumf>, %50, %cst_15 [1, 2] : vector<1x8x128xf32> to vector<1xf32>
    %52 = vector.shape_cast %51 : vector<1xf32> to vector<1x1x1xf32>
    %53 = vector.extract %52[0, 0, 0] : f32 from vector<1x1x1xf32>
    %c0_16 = arith.constant 0 : index
    %54 = memref.load %arg9[%c0_16] : memref<1xf32, #tpu.memory_space<smem>>
    %55 = arith.maximumf %54, %53 : f32
    %c0_17 = arith.constant 0 : index
    %56 = memref.load %arg9[%c0_17] : memref<1xf32, #tpu.memory_space<smem>>
    memref.store %55, %arg9[%c0_17] : memref<1xf32, #tpu.memory_space<smem>>
    %c0_18 = arith.constant 0 : index
    %57 = memref.load %arg7[%c0_18] : memref<1xf32, #tpu.memory_space<smem>>
    %58 = arith.cmpf olt, %48, %57 : f32
    %59 = arith.extui %58 : i1 to i32
    %c0_i32_19 = arith.constant 0 : i32
    %60 = arith.cmpi ne, %59, %c0_i32_19 : i32
    scf.if %60 {
      %c8_i32_22 = arith.constant 8 : i32
      %64 = vector.broadcast %c8_i32_22 : i32 to vector<8x1xi32>
      %65 = arith.muli %23, %64 : vector<8x1xi32>
      %66 = vector.broadcast %65 : vector<8x1xi32> to vector<8x128xi32>
      %67 = vector.broadcast %27 : vector<1x128xi32> to vector<8x128xi32>
      %68 = arith.addi %66, %67 : vector<8x128xi32>
      %69 = vector.broadcast %48 : f32 to vector<8x128xf32>
      %70 = arith.cmpf oeq, %44, %69 : vector<8x128xf32>
      %c2147483647_i32 = arith.constant 2147483647 : i32
      %71 = vector.broadcast %c2147483647_i32 : i32 to vector<8x128xi32>
      %72 = arith.select %70, %68, %71 : vector<8x128xi1>, vector<8x128xi32>
      %73 = vector.shape_cast %72 : vector<8x128xi32> to vector<1x8x128xi32>
      %cst_23 = arith.constant dense<2147483647> : vector<1xi32>
      %74 = vector.multi_reduction <minsi>, %73, %cst_23 [1, 2] : vector<1x8x128xi32> to vector<1xi32>
      %75 = vector.shape_cast %74 : vector<1xi32> to vector<1x1x1xi32>
      %76 = vector.extract %75[0, 0, 0] : i32 from vector<1x1x1xi32>
      %c0_24 = arith.constant 0 : index
      %77 = memref.load %arg8[%c0_24] : memref<1xi32, #tpu.memory_space<smem>>
      memref.store %76, %arg8[%c0_24] : memref<1xi32, #tpu.memory_space<smem>>
      %c0_25 = arith.constant 0 : index
      %78 = memref.load %arg7[%c0_25] : memref<1xf32, #tpu.memory_space<smem>>
      memref.store %48, %arg7[%c0_25] : memref<1xf32, #tpu.memory_space<smem>>
    } else {
    }
    %c0_i32_20 = arith.constant 0 : i32
    %61 = arith.cmpi eq, %arg1, %c0_i32_20 : i32
    %62 = arith.extui %61 : i1 to i32
    %c0_i32_21 = arith.constant 0 : i32
    %63 = arith.cmpi ne, %62, %c0_i32_21 : i32
    scf.if %63 {
      %c0_22 = arith.constant 0 : index
      %64 = memref.load %arg7[%c0_22] : memref<1xf32, #tpu.memory_space<smem>>
      %65 = vector.broadcast %64 : f32 to vector<1x8x128xf32>
      %c0_23 = arith.constant 0 : index
      %c0_24 = arith.constant 0 : index
      %c0_25 = arith.constant 0 : index
      %66 = vector.load %arg4[%c0_23, %c0_24, %c0_25] : memref<1x8x128xf32, #tpu.memory_space<vmem>>, vector<1x8x128xf32>
      tpu.vector_store %arg4[%c0_23, %c0_24, %c0_25], %65 {strides = array<i32>} : memref<1x8x128xf32, #tpu.memory_space<vmem>>, vector<1x8x128xf32>,
      %c0_26 = arith.constant 0 : index
      %67 = memref.load %arg8[%c0_26] : memref<1xi32, #tpu.memory_space<smem>>
      %68 = vector.broadcast %67 : i32 to vector<1x8x128xi32>
      %c0_27 = arith.constant 0 : index
      %c0_28 = arith.constant 0 : index
      %c0_29 = arith.constant 0 : index
      %69 = vector.load %arg5[%c0_27, %c0_28, %c0_29] : memref<1x8x128xi32, #tpu.memory_space<vmem>>, vector<1x8x128xi32>
      tpu.vector_store %arg5[%c0_27, %c0_28, %c0_29], %68 {strides = array<i32>} : memref<1x8x128xi32, #tpu.memory_space<vmem>>, vector<1x8x128xi32>,
      %c0_30 = arith.constant 0 : index
      %70 = memref.load %arg9[%c0_30] : memref<1xf32, #tpu.memory_space<smem>>
      %71 = vector.broadcast %70 : f32 to vector<1x8x128xf32>
      %c0_31 = arith.constant 0 : index
      %c0_32 = arith.constant 0 : index
      %c0_33 = arith.constant 0 : index
      %72 = vector.load %arg6[%c0_31, %c0_32, %c0_33] : memref<1x8x128xf32, #tpu.memory_space<vmem>>, vector<1x8x128xf32>
      tpu.vector_store %arg6[%c0_31, %c0_32, %c0_33], %71 {strides = array<i32>} : memref<1x8x128xf32, #tpu.memory_space<vmem>>, vector<1x8x128xf32>,
    } else {
    }
    return
  }
  func.func @transform_0(%arg0: i32, %arg1: i32) -> (i32, i32) {
    %c0_i32 = arith.constant 0 : i32
    %c0_i32_0 = arith.constant 0 : i32
    return %arg0, %c0_i32 : i32, i32
  }
  func.func @transform_1(%arg0: i32, %arg1: i32) -> (i32, i32) {
    %c0_i32 = arith.constant 0 : i32
    %c0_i32_0 = arith.constant 0 : i32
    %c0_i32_1 = arith.constant 0 : i32
    return %c0_i32, %c0_i32_0 : i32, i32
  }
  func.func @transform_2(%arg0: i32, %arg1: i32) -> (i32, i32, i32) {
    %c0_i32 = arith.constant 0 : i32
    %c0_i32_0 = arith.constant 0 : i32
    %c0_i32_1 = arith.constant 0 : i32
    return %arg0, %c0_i32, %c0_i32_0 : i32, i32, i32
  }
  func.func @transform_3(%arg0: i32, %arg1: i32) -> (i32, i32, i32) {
    %c0_i32 = arith.constant 0 : i32
    %c0_i32_0 = arith.constant 0 : i32
    %c0_i32_1 = arith.constant 0 : i32
    return %arg0, %c0_i32, %c0_i32_0 : i32, i32, i32
  }
  func.func @transform_4(%arg0: i32, %arg1: i32) -> (i32, i32, i32) {
    %c0_i32 = arith.constant 0 : i32
    %c0_i32_0 = arith.constant 0 : i32
    %c0_i32_1 = arith.constant 0 : i32
    return %arg0, %c0_i32, %c0_i32_0 : i32, i32, i32
  }
}

</mosaic_0001>

<bundles_post_ra>
// kernel: _exact_solution_call.1
= control target key start
LH: loop header
LB: loop body
LE: loop exit
PB: predicated region body
PF: predicated region fallthrough
CT: control target
= control target key end

     0   :  { %10 = vsyncpa [#allocation6], 0  ;;  %s409_s0 = inlined_call_operand.vmem [shape: f32[8,128], index: 0, kind: input, shape index: {}]   ;;  %s410_s1 = inlined_call_operand.hbm [shape: bf16[128,128], index: 1, kind: input, shape index: {}]   ;;  %s411_s2 = inlined_call_operand.hbm [shape: f32[1,8,128], index: 2, kind: output, shape index: {0}]   ;;  %s412_s3 = inlined_call_operand.vmem [shape: s32[1,8,128], index: 3, kind: output, shape index: {1}]   ;;  %s413_s4 = inlined_call_operand.vmem [shape: f32[1,8,128], index: 4, kind: output, shape index: {2}]  }
   0x1   :  { %11 = vsyncpa [#allocation7], 0  ;;  %s18_s17 = sshll.u32 %s410_s1, 4  ;;  %s362_s18 = smov [#allocation5]   ;;  %s19_s17 = int_to_ptr.hbm [resolvable:$true] %s18_s17 }
   0x2   :  { %s20_s19 = sshll.u32 %s362_s18, 4  ;;  %s363_s20 = smov 64   ;;  %s21_s19 = int_to_ptr.vmem [resolvable:$true] %s20_s19 }
   0x3   :  { %s364_s21 = smov 4  }
   0x4   :  { %26 = dma.hbm_to_vmem [thread:$0]  %s19_s17, 1024, %s21_s19, [#allocation6], %s363_s20, %s363_s20, %s364_s21  }
   0x5   :  { %358 = dma.done.wait [#allocation6], 1024  }
   0x6   :  { %359 = vsyncadd [#allocation6], 4294966272  ;;  %s365_s22 = smov 0   ;;  %v293_v0 = vld [vmem:[#allocation5 + $0x38] sm:$0xff]  ;;  %v41_v1 = vld [vmem:[%s409_s0] sm:$0xff]  ;;  %v138_v17 = vlaneseq  ;;  %v366_v22 = vmov inf  }
   0x7   :  { %38 = sst [smem:[#allocation3]] %s365_s22  ;;  %v42_v2 = vmul.f32 %v41_v1, %v41_v1  ;;  %121 = vmatpush.bf16.msra.mxu0 %v293_v0  ;;  %v292_v3 = vld [vmem:[#allocation5 + $0x30] sm:$0xff]  ;;  %v291_v4 = vld [vmem:[#allocation5 + $0x28] sm:$0xff]  ;;  %v290_v5 = vld [vmem:[#allocation5 + $0x20] sm:$0xff]  ;;  %v56_v10 = vpack.c.bf16 %v41_v1, %v41_v1  ;;  %s367_s0 = smov inf  }
   0x8   :  { %v289_v6 = vld [vmem:[#allocation5 + $0x18] sm:$0xff]  ;;  %v288_v7 = vld [vmem:[#allocation5 + $0x10] sm:$0xff]  ;;  %v287_v8 = vld [vmem:[#allocation5 + $0x8] sm:$0xff]  ;;  %v139_v19 = vshrl.u32 %v138_v17, 7  ;;  %v144_v20 = vand.u32 127, %v138_v17  ;;  %36 = sst [smem:[#allocation2]] %s367_s0 }
   0x9   :  { %43 = vadd.xlane.f32.xlu0 %v42_v2  ;;  %v286_v9 = vld [vmem:[#allocation5] sm:$0xff] }
   0xa   :  { %vm148_vm2 = vcmp.lt.s32.totalorder %v139_v19, 1  ;;  %vm150_vm3 = vcmp.lt.s32.totalorder %v144_v20, 8 }
   0xb   :  { %122 = vmatpush.bf16.msra.mxu0 %v292_v3  ;;  %v149_v23 = vsel %vm148_vm2, 0.0, %v366_v22  ;;  %v151_v24 = vsel %vm150_vm3, 0.0, %v366_v22 }
   0xc   :  { %v152_v28 = vadd.f32 %v151_v24, %v149_v23 }
   0xf   :  { %123 = vmatpush.bf16.msra.mxu0 %v291_v4 }
  0x13   :  { %124 = vmatpush.bf16.msra.mxu0 %v290_v5 }
  0x17   :  { %125 = vmatpush.bf16.msra.mxu0 %v289_v6 }
  0x1b   :  { %126 = vmatpush.bf16.msra.mxu0 %v288_v7 }
  0x1f   :  { %127 = vmatpush.bf16.msra.mxu0 %v287_v8 }
  0x23   :  { %128 = vmatpush.bf16.msra.mxu0 %v286_v9 }
  0x26   :  { %129 = vmatmul.bf16.vlgmr.msra.gmra.mxu0 %v56_v10 }
  0x7c   :  { %v44_v11 = vpop.xlane.xlu0 %43 }
  0x7d   :  { %v45_v12 = vadd.f32 1e-12, %v44_v11 }
  0x7f   :  { %308 = vrsqrt.f32 %v45_v12  ;;  %vm52_vm0 = vweird.f32 %v45_v12 }
  0x85   :  { %v309_v13 = vpop.eup %308 }
  0x86   :  { %v47_v14 = vmul.f32 %v309_v13, %v45_v12  ;;  %vm53_vm1 = vweird.f32 %v309_v13 }
  0x87   :  { %vm54_vm4 = vmor %vm52_vm0, %vm53_vm1 }
  0x88   :  { %v48_v15 = vmul.f32 %v309_v13, %v47_v14 }
  0x8a   :  { %v49_v16 = vmul.f32 0.5, %v48_v15 }
  0x8c   :  { %v50_v18 = vsub.f32 1.5, %v49_v16 }
  0x8e   :  { %v51_v21 = vmul.f32 %v309_v13, %v50_v18 }
  0x90   :  { %v55_v25 = vsel %vm54_vm4, %v309_v13, %v51_v21 }
  0xa3   :  { %v130_v26 = vpop.f32.mrf.mxu0 }
  0xa4   :  { %v134_v27 = vmul.f32 %v130_v26, %v55_v25 }
  0xa6   :  { %v136_v29 = vsub.f32 2.0, %v134_v27  ;;  %vm135_vm5 = vcmp.gt.f32.partialorder %v134_v27, 1.0 }
  0xa8   :  { %v137_v30 = vsel %vm135_vm5, %v136_v29, %v134_v27 }
  0xa9   :  { %v165_v31 = vsub.f32 %v137_v30, %v152_v28  ;;  %v153_v32 = vsub.f32 1.0, %v137_v30 }
  0xab   :  { %v132_v33 = vpop.f32.mrf.mxu0  ;;  %166 = vmax.xlane.f32.xlu1 %v165_v31  ;;  %v154_v34 = vand.u32 2147483647, %v153_v32 }
  0xad   :  { %v155_v35 = vadd.f32 %v154_v34, %v152_v28 }
  0xaf   :  { %156 = vmin.xlane.f32.xlu0 %v155_v35 }
 0x11e   :  { %v167_v36 = vpop.xlane.xlu1 %166 }
 0x11f   :  { %v168_v37 = vrot.slane %v167_v36, 4 }
 0x121   :  { %v169_v38 = vmax.f32 %v167_v36, %v168_v37 }
 0x122   :  { %v157_v39 = vpop.xlane.xlu0 %156 }
 0x123   :  { %v170_v40 = vrot.slane %v169_v38, 2  ;;  %v158_v41 = vrot.slane %v157_v39, 4 }
 0x125   :  { %v159_v42 = vmin.f32 %v157_v39, %v158_v41  ;;  %v171_v43 = vmax.f32 %v169_v38, %v170_v40 }
 0x127   :  { %v160_v44 = vrot.slane %v159_v42, 2  ;;  %v172_v46 = vrot.slane %v171_v43, 1 }
 0x129   :  { %v161_v45 = vmin.f32 %v159_v42, %v160_v44  ;;  %v173_v49 = vmax.f32 %v171_v43, %v172_v46 }
 0x12b   :  { %v162_v47 = vrot.slane %v161_v45, 1 }
 0x12d   :  { %v163_v48 = vmin.f32 %v161_v45, %v162_v47 }
 0x12f   :  { %294 = vpush %v163_v48 }
 0x130   :  { %296 = vpush %v173_v49 }
 0x160   :  { %s295_s1 = spop %294 }
 0x161   :  { %p180_p0 = scmp.lt.f32.partialorder %s295_s1, inf  ;;  %s297_s25 = spop %296 }
 0x162   :  { %178 = sst [smem:[#allocation4]] %s297_s25  ;;  %v184_v50 = vmul.u32 (%p180_p0), 8, %v139_v19  ;;  %v186_v51 = vstv (%p180_p0), %s295_s1 }
 0x163   :  { %183 = sbr.rel (!%p180_p0) target bundleno = 664 (0x298), region = 21  ;;  %216 = sst [smem:[#allocation2]] (%p180_p0), %s295_s1  ;;  %vm187_vm6 = vcmp.eq.f32.partialorder (%p180_p0), %v155_v35, %v186_v51 }
 0x164   :  { %v185_v52 = vadd.s32 (%p180_p0), %v184_v50, %v144_v20 }
 0x166   :  { %v188_v53 = vsel (%p180_p0), %vm187_vm6, %v185_v52, 2147483647 }
 0x167   :  { %v190_v54 = vshra.s32 (%p180_p0), %v188_v53, 16  ;;  %v189_v56 = vand.u32 (%p180_p0), 65535, %v188_v53 }
 0x169   :  { %v192_v55 = vcvt.s32.f32 %v190_v54  ;;  %v191_v57 = vcvt.s32.f32 %v189_v56 }
 0x16b   :  { %193 = vmin.xlane.f32.xlu0 %v192_v55 }
 0x1de   :  { %v194_v58 = vpop.xlane.xlu0 %193 }
 0x1df   :  { %vm195_vm7 = vcmp.eq.f32.partialorder %v192_v55, %v194_v58  ;;  %v200_v60 = vcvt.f32.s32 %v194_v58 }
 0x1e0   :  { %v196_v59 = vsel %vm195_vm7, %v191_v57, inf }
 0x1e1   :  { %197 = vmin.xlane.f32.xlu0 %v196_v59  ;;  %v201_v62 = vshll.u32 %v200_v60, 16 }
 0x254   :  { %v198_v61 = vpop.xlane.xlu0 %197 }
 0x255   :  { %v199_v63 = vcvt.f32.s32 %v198_v61 }
 0x257   :  { %v202_v0 = vadd.s32 %v201_v62, %v199_v63 }
 0x259   :  { %v203_v1 = vrot.slane %v202_v0, 4 }
 0x25b   :  { %vm204_vm8 = vcmp.lt.s32.totalorder %v202_v0, %v203_v1 }
 0x25c   :  { %v205_v2 = vsel %vm204_vm8, %v202_v0, %v203_v1 }
 0x25d   :  { %v206_v3 = vrot.slane %v205_v2, 2 }
 0x25f   :  { %vm207_vm9 = vcmp.lt.s32.totalorder %v205_v2, %v206_v3 }
 0x260   :  { %v208_v4 = vsel %vm207_vm9, %v205_v2, %v206_v3 }
 0x261   :  { %v209_v5 = vrot.slane %v208_v4, 1 }
 0x263   :  { %vm210_vm10 = vcmp.lt.s32.totalorder %v208_v4, %v209_v5 }
 0x264   :  { %v211_v6 = vsel %vm210_vm10, %v208_v4, %v209_v5 }
 0x265   :  { %298 = vpush %v211_v6 }
 0x296   :  { %s299_s26 = spop %298 }
 0x297   :  { %214 = sst [smem:[#allocation3]] %s299_s26 }
 0x298 PF:  { %s220_s27 = sld [smem:[#allocation2]]  ;;  %s368_s30 = smov [#allocation8]  }
 0x299   :  { %s223_s28 = sld [smem:[#allocation3]]  ;;  %s234_s5 = sshll.u32 %s368_s30, 4  ;;  %s235_s5 = int_to_ptr.vmem [resolvable:$true] %s234_s5 }
 0x29a   :  { %s226_s29 = sld [smem:[#allocation4]]  ;;  %s236_s8 = sshll.u32 %s411_s2, 4  ;;  %s237_s8 = int_to_ptr.hbm [resolvable:$true] %s236_s8 }
 0x29e   :  { %v221_v7 = vstv %s220_s27 }
 0x29f   :  { %222 = vst [vmem:[#allocation8] sm:$0xff] %v221_v7  ;;  %v224_v8 = vstv %s223_s28 }
 0x2a0   :  { %225 = vst [vmem:[%s412_s3] sm:$0xff] %v224_v8  ;;  %v227_v9 = vstv %s226_s29  ;;  %239 = dma.vmem_to_hbm [thread:$0]  %s235_s5, 128, %s237_s8, [#allocation7]  }
 0x2a1   :  { %228 = vst [vmem:[%s413_s4] sm:$0xff] %v227_v9 }
 0x2a2   :  { %360 = dma.done.wait [#allocation7], 128  }
 0x2a3   :  { %361 = vsyncadd [#allocation7], 4294967168 }
 0x2a4   :  { %252 = vsyncpa [#allocation6], 1 }
 0x2a5   :  { %253 = vsyncpa [#allocation7], 1 }

</bundles_post_ra>
